<compile_context>
chip_gen: v7x
topology: tpu7x:2x2x1
jax: 0.10.0
libtpu: 0.0.40
codegen_flags: <defaults>
</compile_context>

<pallas_src>
import functools

import jax
import jax.numpy as jnp
from jax import lax
from jax.experimental import pallas as pl
from jax.experimental.pallas import tpu as pltpu

KSIZE = 31          # depthwise kernel size
PAD = KSIZE // 2    # 'same' padding (stride=1, dilation=1)
EPS = 1e-5          # BatchNorm eps
NACC = 4            # independent partial accumulators for the 31-tap chain


@functools.lru_cache(maxsize=None)
def _roll_like_jnp() -> bool:
    """One-time 1-vreg probe pinning pltpu.roll's rotation direction.

    The tap indexing assumes pltpu.roll matches jnp.roll (element i moves to
    i + shift).  This cheap probe makes the kernel robust if the convention
    ever differs.  Cached; if phantom_conv is wrapped in jax.jit, call this
    once eagerly beforehand.
    """
    def probe(x_ref, o_ref):
        o_ref[...] = pltpu.roll(x_ref[...], 1, 1)

    x = jnp.tile(lax.iota(jnp.float32, 128)[None, :], (8, 1))
    out = pl.pallas_call(
        probe, out_shape=jax.ShapeDtypeStruct((8, 128), jnp.float32))(x)
    # jnp.roll convention: out[0, 0] == x[-1] == 127 ; opposite: == x[1] == 1.
    return bool(out[0, 0] > 64.0)


def phantom_kernel(x_ref, wp_ref, aff_ref, wd_ref, y_ref, z_ref, *,
                   roll_like_jnp: bool):
    """One grid step: bn batch elements, all channels.

    Layout is channels-first (C, bn, L): batch in sublanes, L in lanes, so
    per-channel parameters are SMEM scalars (no vector broadcasts) and every
    depthwise tap window is built in registers via an XLU lane roll + edge
    mask (no pad scratch, no lane-unaligned VMEM window loads).
    """
    cin, bn, L = x_ref.shape
    cp = y_ref.shape[0]
    assert z_ref.shape[0] == cp  # 1:1 ghost ratio (asserted in the wrapper)

    # Hoisted lane index for the depthwise edge masks.
    lane = lax.broadcasted_iota(jnp.int32, (bn, L), 1)

    # ---- primary_conv: 1x1 conv, bias folded into the accumulator init ----
    # Stream x one input channel at a time (load + bf16->f32 cast inside the
    # loop bounds the live range to one (bn, L) block); each output channel
    # keeps its own accumulator so the Cin-long FMA chains are independent.
    acc = [jnp.full((bn, L), aff_ref[o, 0], jnp.float32) for o in range(cp)]
    for c in range(cin):
        xc = x_ref[c].astype(jnp.float32)
        for o in range(cp):
            acc[o] = acc[o] + wp_ref[o, c] * xc
    # TODO(synk): for Cin > 32 replace this VPU loop with a single MXU matmul
    # over a (Cin, bn*L) x tile (channels-last 2-D layout from the wrapper) so
    # M/N are >= 128; not exercised by the shipped small-Cin configs.

    for o in range(cp):
        # PReLU (single shared alpha) + eval-mode BatchNorm folded to
        # per-channel scale/shift (all SMEM scalars -> sreg operands).
        y_o = acc[o]
        y_o = jnp.where(y_o >= 0.0, y_o, aff_ref[o, 5] * y_o)
        y_o = y_o * aff_ref[o, 1] + aff_ref[o, 2]
        y_ref[o] = y_o.astype(y_ref.dtype)

        # ---- cheap_conv: depthwise conv (k=31, 'same'), channel o ----
        # win_d[l] = y_o[l + d] (zero outside [0, L)), built as an XLU lane
        # roll of in-register y_o plus one edge mask from the hoisted iota.
        # Taps use NACC independent partial accumulators (latency hiding) and
        # SMEM-scalar weights (no per-tap vector slice load / broadcast).
        parts = []
        for k in range(KSIZE):
            d = k - PAD
            if d == 0:
                win = y_o
            else:
                shift = (-d) % L if roll_like_jnp else d % L
                rolled = pltpu.roll(y_o, shift, 1)
                if d > 0:
                    win = jnp.where(lane < L - d, rolled, 0.0)
                else:
                    win = jnp.where(lane >= -d, rolled, 0.0)
            tap = wd_ref[o, k] * win
            if len(parts) < NACC:
                parts.append(tap)
            else:
                parts[k % NACC] = parts[k % NACC] + tap
        z_o = (parts[0] + parts[1]) + (parts[2] + parts[3])

        z_o = jnp.where(z_o >= 0.0, z_o, aff_ref[o, 6] * z_o)
        z_o = z_o * aff_ref[o, 3] + aff_ref[o, 4]
        z_ref[o] = z_o.astype(z_ref.dtype)


def _pick_bn(n, per_batch_bytes, budget_bytes):
    """Batch elements per grid step.

    Prefer bn that (a) keeps the second-minor block dim tile-friendly
    (bn == N or bn % 8 == 0), (b) fits the double-buffered VMEM budget and
    (c) leaves >= 4 grid steps (>= 2 per v7x TensorCore) when N allows.
    """
    cands = [d for d in range(1, n + 1)
             if n % d == 0 and (d == n or d % 8 == 0)]
    fitting = [d for d in cands if 2 * d * per_batch_bytes <= budget_bytes]
    if not fitting:
        fitting = [min(cands)]
    target_steps = 8 if n >= 64 else min(n, 4)
    good = [d for d in fitting if n // d >= target_steps]
    if good:
        return max(good)
    return min(fitting)     # otherwise take the most grid steps that fit


def phantom_conv(x, params):
    """PhantomConv forward (eval mode), NCL in / NCL out, bf16 result."""
    (wp, bp, alpha_p, g1, b1, m1, v1,
     wd, alpha_c, g2, b2, m2, v2) = params
    n, cin, L = x.shape
    cp = wp.shape[0]
    cc = wd.shape[0]
    # The packed per-channel affine rows pair BN1 (primary) and BN2 (cheap)
    # params by row index; this relies on the module's 1:1 ghost ratio
    # (depthwise groups == cheap channels == primary channels).
    assert cp == cc, "PhantomConv depthwise requires Cp == Cc"
    assert wd.shape[-1] == KSIZE

    # Fold eval-mode BatchNorm into per-channel scale/shift and pack all
    # per-channel scalars into one small (Cp, 8) SMEM operand:
    #   [pw bias, BN1 scale, BN1 shift, BN2 scale, BN2 shift, a_p, a_c, 0]
    s1 = g1 / jnp.sqrt(v1 + EPS)
    t1 = b1 - m1 * s1
    s2 = g2 / jnp.sqrt(v2 + EPS)
    t2 = b2 - m2 * s2
    a_p = jnp.broadcast_to(jnp.asarray(alpha_p, jnp.float32).reshape(-1), (cp,))
    a_c = jnp.broadcast_to(jnp.asarray(alpha_c, jnp.float32).reshape(-1), (cc,))
    aff = jnp.stack([bp, s1, t1, s2, t2, a_p, a_c, jnp.zeros_like(bp)],
                    axis=1).astype(jnp.float32)                    # (Cp, 8)
    wpf = wp.astype(jnp.float32)                                   # (Cp, Cin)
    wdf = wd.reshape(cc, KSIZE).astype(jnp.float32)                # (Cc, 31)

    # Channels-first, batch-in-sublanes layout (sublane packing): per-channel
    # params become SMEM scalars and the (bn, L) slabs fill all sublanes
    # whenever N allows bn >= 8.  x / outputs are bf16 for HBM traffic.
    x_cf = jnp.transpose(x, (1, 0, 2)).astype(jnp.bfloat16)        # (Cin, N, L)

    per_batch = (cin + cp + cc) * L * 2            # bf16 bytes per batch elem
    budget = 40 * 2 ** 20                          # headroom under v7x 64 MiB
    bn = _pick_bn(n, per_batch, budget)
    grid = (n // bn,)
    vmem_limit = int(min(48 * 2 ** 20, max(8 * 2 ** 20, 4 * bn * per_batch)))
    # TODO(synk): for long L add an L grid axis with a 2*PAD halo (re-derive
    # the budget); for large Cp move the per-channel python loop onto a grid
    # axis to bound unrolled code size and register pressure.

    kernel = functools.partial(phantom_kernel, roll_like_jnp=_roll_like_jnp())

    y_cf, z_cf = pl.pallas_call(
        kernel,
        out_shape=(jax.ShapeDtypeStruct((cp, n, L), jnp.bfloat16),
                   jax.ShapeDtypeStruct((cc, n, L), jnp.bfloat16)),
        grid=grid,
        in_specs=[
            pl.BlockSpec((cin, bn, L), lambda i: (0, i, 0)),          # x
            pl.BlockSpec(memory_space=pltpu.MemorySpace.SMEM),        # 1x1 w
            pl.BlockSpec(memory_space=pltpu.MemorySpace.SMEM),        # affine
            pl.BlockSpec(memory_space=pltpu.MemorySpace.SMEM),        # dw w
        ],
        out_specs=(
            pl.BlockSpec((cp, bn, L), lambda i: (0, i, 0)),
            pl.BlockSpec((cc, bn, L), lambda i: (0, i, 0)),
        ),
        compiler_params=pltpu.CompilerParams(
            dimension_semantics=("parallel",),
            vmem_limit_bytes=vmem_limit),
    )(x_cf, wpf, aff, wdf)

    # Concat (and NCL layout restore) stays in the wrapper so both kernel
    # stores are dense blocks.
    y = jnp.transpose(y_cf, (1, 0, 2))
    z = jnp.transpose(z_cf, (1, 0, 2))
    return jnp.concatenate([y, z], axis=1)


def phantom_ref(x, params):
    """Pure-JAX reference (matches PyTorch eval-mode forward)."""
    (wp, bp, alpha_p, g1, b1, m1, v1,
     wd, alpha_c, g2, b2, m2, v2) = params
    y = jnp.einsum('oc,ncl->nol', wp, x) + bp[None, :, None]
    y = jnp.where(y >= 0, y, alpha_p * y)
    y = ((y - m1[None, :, None]) / jnp.sqrt(v1 + EPS)[None, :, None]
         * g1[None, :, None] + b1[None, :, None])
    z = lax.conv_general_dilated(
        y, wd, window_strides=(1,), padding='SAME',
        dimension_numbers=('NCH', 'OIH', 'NCH'),
        feature_group_count=y.shape[1])
    z = jnp.where(z >= 0, z, alpha_c * z)
    z = ((z - m2[None, :, None]) / jnp.sqrt(v2 + EPS)[None, :, None]
         * g2[None, :, None] + b2[None, :, None])
    return jnp.concatenate([y, z], axis=1)


if __name__ == "__main__":
    key = jax.random.PRNGKey(0)
    N, Cin, Cout, L = 2, 4, 8, 128
    Cp = Cout // 2
    Cc = Cout - Cp
    ks = jax.random.split(key, 12)

    x = jax.random.normal(ks[0], (N, Cin, L), jnp.float32)

    # deterministic synthetic parameters (same shapes as the nn.Module __init__)
    wp = 0.3 * jax.random.normal(ks[1], (Cp, Cin), jnp.float32)        # 1x1 conv weight
    bp = 0.1 * jax.random.normal(ks[2], (Cp,), jnp.float32)            # 1x1 conv bias
    alpha_p = jnp.float32(0.25)                                        # PReLU default
    g1 = 1.0 + 0.1 * jax.random.normal(ks[3], (Cp,), jnp.float32)
    b1 = 0.1 * jax.random.normal(ks[4], (Cp,), jnp.float32)
    m1 = 0.1 * jax.random.normal(ks[5], (Cp,), jnp.float32)
    v1 = 1.0 + 0.1 * jnp.abs(jax.random.normal(ks[6], (Cp,), jnp.float32))
    wd = 0.2 * jax.random.normal(ks[7], (Cc, 1, KSIZE), jnp.float32)   # depthwise weight
    alpha_c = jnp.float32(0.25)
    g2 = 1.0 + 0.1 * jax.random.normal(ks[8], (Cc,), jnp.float32)
    b2 = 0.1 * jax.random.normal(ks[9], (Cc,), jnp.float32)
    m2 = 0.1 * jax.random.normal(ks[10], (Cc,), jnp.float32)
    v2 = 1.0 + 0.1 * jnp.abs(jax.random.normal(ks[11], (Cc,), jnp.float32))

    # Pre-round x to bf16 so the f32 reference sees exactly the values the
    # kernel consumes; the remaining diff is the bf16 output store.
    x = x.astype(jnp.bfloat16).astype(jnp.float32)

    params = (wp, bp, alpha_p, g1, b1, m1, v1, wd, alpha_c, g2, b2, m2, v2)

    out = jax.block_until_ready(phantom_conv(x, params))
    ref = jax.block_until_ready(phantom_ref(x, params))
    assert out.shape == (N, Cout, L)
    err = float(jnp.max(jnp.abs(out.astype(jnp.float32) - ref)))
    assert jnp.allclose(out.astype(jnp.float32), ref, rtol=2e-2, atol=2e-2), err
    print("KERNEL_OK")
</pallas_src>

<mosaic_0001>
module attributes {stable_mosaic.version = 11 : i64} {
  func.func @probe(%arg0: memref<8x128xf32, #tpu.memory_space<vmem>>, %arg1: memref<8x128xf32, #tpu.memory_space<vmem>>) attributes {dimension_semantics = [], scalar_prefetch = 0 : i64, scratch_operands = 0 : i64, tpu.core_type = #tpu.core_type<tc>} {
    %c0 = arith.constant 0 : index
    %c0_0 = arith.constant 0 : index
    %0 = vector.load %arg0[%c0, %c0_0] : memref<8x128xf32, #tpu.memory_space<vmem>>, vector<8x128xf32>
    %c1_i32 = arith.constant 1 : i32
    %1 = tpu.dynamic_rotate %0 by %c1_i32 dim 1 : vector<8x128xf32>, i32 -> vector<8x128xf32>
    %c0_1 = arith.constant 0 : index
    %c0_2 = arith.constant 0 : index
    %2 = vector.load %arg1[%c0_1, %c0_2] : memref<8x128xf32, #tpu.memory_space<vmem>>, vector<8x128xf32>
    tpu.vector_store %arg1[%c0_1, %c0_2], %1 {strides = array<i32>} : memref<8x128xf32, #tpu.memory_space<vmem>>, vector<8x128xf32>,
    return
  }
}

</mosaic_0001>

<bundles_post_ra>
// kernel: tpu_custom_call.1
= control target key start
LH: loop header
LB: loop body
LE: loop exit
PB: predicated region body
PF: predicated region fallthrough
CT: control target
= control target key end

     0   :  { %6 = vsyncpa [#allocation3], 0  ;;  %s128_s0 = inlined_call_operand.hbm [shape: f32[8,128], index: 0, kind: input, shape index: {}]   ;;  %s129_s1 = inlined_call_operand.hbm [shape: f32[8,128], index: 1, kind: output, shape index: {}]  }
   0x1   :  { %7 = vsyncpa [#allocation4], 0  ;;  %s91_s6 = smov [#allocation2]   ;;  %s43_s10 = scalar_lea.hbm %s128_s0, 128 }
   0x2   :  { %s14_s7 = sshll.u32 %s91_s6, 4  ;;  %p44_p0 = scmp.ne.s32.totalorder %s128_s0, %s43_s10  ;;  %s15_s7 = int_to_ptr.vmem [resolvable:$true] %s14_s7 }
   0x3   :  { %p47_p1 = scmp.lt.u32.totalorder %s43_s10, %s128_s0 }
   0x5   :  { %p49_p2 = pnand %p47_p1, %p44_p0 }
   0x7   :  { %52 = shalt.err (!%p49_p2)
}
   0x8   :  { %s53_s15 = scalar_lea.vmem %s15_s7, 128  ;;  %p58_p4 = scmp.lt.s32.totalorder %s15_s7, %s15_s7 }
   0x9   :  { %p54_p3 = scmp.ne.s32.totalorder %s15_s7, %s53_s15  ;;  %p59_p5 = scmp.lt.s32.totalorder %s53_s15, %s53_s15 }
   0xb   :  { %p60_p6 = por %p59_p5, %p58_p4 }
   0xd   :  { %p61_p7 = pnand %p60_p6, %p54_p3 }
   0xf   :  { %64 = shalt.err (!%p61_p7)
}
  0x10   :  { %17 = dma.hbm_to_vmem [thread:$0]  %s128_s0, 128, %s15_s7, [#allocation3]  }
  0x11   :  { %87 = dma.done.wait [#allocation3], 128  }
  0x12   :  { %88 = vsyncadd [#allocation3], 4294967168  ;;  %v21_v0 = vld [vmem:[#allocation2] sm:$0xff]  ;;  %s92_s18 = smov 1   ;;  %s93_s19 = smov [#allocation5]  }
  0x13   :  { %22 = vrot.lane.b32.xlu0 %v21_v0, %s92_s18  ;;  %s31_s20 = sshll.u32 %s93_s19, 4  ;;  %s32_s20 = int_to_ptr.vmem [resolvable:$true] %s31_s20 }
  0x14   :  { %s65_s21 = scalar_lea.vmem %s32_s20, 128  ;;  %p70_p9 = scmp.lt.s32.totalorder %s32_s20, %s32_s20 }
  0x15   :  { %p66_p8 = scmp.ne.s32.totalorder %s32_s20, %s65_s21  ;;  %p71_p10 = scmp.lt.s32.totalorder %s65_s21, %s65_s21 }
  0x17   :  { %p72_p11 = por %p71_p10, %p70_p9 }
  0x19   :  { %p73_p12 = pnand %p72_p11, %p66_p8 }
  0x85   :  { %v23_v1 = vpop.permute.xlu0 %22 }
  0x86   :  { %24 = vst [vmem:[#allocation5] sm:$0xff] %v23_v1 }
  0x87   :  { %76 = shalt.err (!%p73_p12)
}
  0x88   :  { %s77_s0 = scalar_lea.hbm %s129_s1, 128 }
  0x89   :  { %p78_p13 = scmp.ne.s32.totalorder %s129_s1, %s77_s0  ;;  %p81_p0 = scmp.lt.u32.totalorder %s77_s0, %s129_s1 }
  0x8b   :  { %p83_p1 = pnand %p81_p0, %p78_p13 }
  0x8d   :  { %86 = shalt.err (!%p83_p1)
}
  0x8e   :  { %34 = dma.vmem_to_hbm [thread:$0]  %s32_s20, 128, %s129_s1, [#allocation4]  }
  0x8f   :  { %89 = dma.done.wait [#allocation4], 128  }
  0x90   :  { %90 = vsyncadd [#allocation4], 4294967168 }
  0x91   :  { %38 = vsyncpa [#allocation3], 1 }
  0x92   :  { %39 = vsyncpa [#allocation4], 1 }

</bundles_post_ra>
